<compile_context>
chip_gen: v7x
topology: tpu7x:2x2x1
jax: 0.10.0
libtpu: 0.0.40
codegen_flags: <defaults>
</compile_context>

<pallas_src>
import functools

import jax
import jax.numpy as jnp
import numpy as np
from jax import lax
from jax.experimental import pallas as pl
from jax.experimental.pallas import tpu as pltpu


# ----------------------------------------------------------------------------
# The single Pallas kernel: out = [relu](W @ A + bias_col)
# ----------------------------------------------------------------------------
def _mm_bias_relu_kernel(w_ref, a_ref, b_ref, o_ref, *, relu):
    acc = jnp.dot(w_ref[...], a_ref[...], preferred_element_type=jnp.float32)
    acc = acc + b_ref[...]
    if relu:
        acc = jnp.maximum(acc, 0.0)
    o_ref[...] = acc.astype(o_ref.dtype)


def _round_up(n, m):
    return ((n + m - 1) // m) * m


def _pick_tile_n(M, O):
    """Lane tile along M = N*H*W.

    Small M -> one grid step (per-step fixed cost dominates; single-TC chips
    gain nothing from more steps).  Larger M -> ~2 even steps, capped so the
    (O, TN) f32 accumulator stays ~<=192 KiB to avoid vreg spills.
    """
    if M <= 512:
        return M                                  # full dim: always legal
    cap = max(128, ((192 * 1024) // (4 * max(O, 8))) // 128 * 128)
    half = _round_up((M + 1) // 2, 128)           # aim for 2 balanced steps
    return max(128, min(cap, half))


def matmul_bias_relu(w, a, bias_col, *, relu=True, out_dtype=None):
    """(O,K)@(K,M) + bias[:,None] (+ ReLU).  Weights/bias are pre-packed,
    pre-cast arrays from prepare_params — no glue ops inside the jitted fwd."""
    O, K = w.shape
    K2, M = a.shape
    assert K == K2
    TN = _pick_tile_n(M, O)
    out_dtype = a.dtype if out_dtype is None else out_dtype
    return pl.pallas_call(
        functools.partial(_mm_bias_relu_kernel, relu=relu),
        out_shape=jax.ShapeDtypeStruct((O, M), out_dtype),
        grid=(pl.cdiv(M, TN),),
        in_specs=[
            pl.BlockSpec((O, K), lambda i: (0, 0)),    # weight: grid-invariant
            pl.BlockSpec((K, TN), lambda i: (0, i)),   # activations: lane tile
            pl.BlockSpec((O, 1), lambda i: (0, 0)),    # bias column (f32)
        ],
        out_specs=pl.BlockSpec((O, TN), lambda i: (0, i)),
        compiler_params=pltpu.CompilerParams(dimension_semantics=("parallel",)),
    )(w, a, bias_col)


# ----------------------------------------------------------------------------
# plain-JAX glue (data side only): channels-first im2col
# ----------------------------------------------------------------------------
def extract_patches_cm(x, kh, kw, sh, sw, ph, pw, dh, dw):
    """x: (C, N, H, W) -> (kh*kw*C, N*Ho*Wo) patch rows, tap-major/channel-minor."""
    C, N, H, W = x.shape
    Ho = (H + 2 * ph - (dh * (kh - 1) + 1)) // sh + 1
    Wo = (W + 2 * pw - (dw * (kw - 1) + 1)) // sw + 1
    if kh == 1 and kw == 1 and ph == 0 and pw == 0 and sh == 1 and sw == 1:
        return x.reshape(C, N * H * W), Ho, Wo          # 1x1 conv: no im2col
    xp = jnp.pad(x, ((0, 0), (0, 0), (ph, ph), (pw, pw)))
    taps = []
    for i in range(kh):
        for j in range(kw):
            taps.append(xp[:, :, i * dh: i * dh + (Ho - 1) * sh + 1: sh,
                                 j * dw: j * dw + (Wo - 1) * sw + 1: sw])
    patches = jnp.concatenate(taps, axis=0)             # (kh*kw*C, N, Ho, Wo)
    return patches.reshape(kh * kw * C, N * Ho * Wo), Ho, Wo


def _block_diag(mats):
    if len(mats) == 1:
        return mats[0]
    O = sum(m.shape[0] for m in mats)
    K = sum(m.shape[1] for m in mats)
    out = jnp.zeros((O, K), mats[0].dtype)
    ro = co = 0
    for m in mats:
        out = out.at[ro:ro + m.shape[0], co:co + m.shape[1]].set(m)
        ro += m.shape[0]
        co += m.shape[1]
    return out


# ----------------------------------------------------------------------------
# One-time parameter packing (runs ONCE, outside the jitted forward)
# ----------------------------------------------------------------------------
def prepare_params(params, cfg, scale=1.0, compute_dtype=jnp.float32):
    """Fold BN, fuse/pack/pad weight matrices, pre-cast and pre-shape biases."""
    f32 = jnp.float32

    def fold(p, extra_scale=1.0):
        O, I, kh, kw = p['w'].shape
        s = p['gamma'] / jnp.sqrt(p['var'] + 1e-5)
        wmat = jnp.transpose(p['w'], (0, 2, 3, 1)).reshape(O, kh * kw * I).astype(f32)
        wmat = wmat * (s * extra_scale)[:, None]
        bias = ((p['beta'] - p['mean'] * s) * extra_scale).astype(f32)
        return wmat, bias

    def pad_rows(w, b, mult=8):
        o = w.shape[0]
        op = _round_up(o, mult)
        return jnp.pad(w, ((0, op - o), (0, 0))), jnp.pad(b, (0, op - o)), o, op

    packed, meta = {}, {}

    # ---- stage A: four 1x1 branch stems (shortcut removed; folded into final) ----
    w_list, b_list, seg, row = [], [], [], 0
    for name in ('branch0', 'branch1', 'branch2', 'branch3'):
        wm, bv = fold(params[name][0])
        wm, bv, o, op = pad_rows(wm, bv)     # sublane-aligned segment starts
        w_list.append(wm); b_list.append(bv)
        seg.append((row, o)); row += op
    packed['w_stem'] = jnp.concatenate(w_list, 0).astype(compute_dtype)
    packed['b_stem'] = jnp.concatenate(b_list, 0).reshape(-1, 1)
    meta['stem_seg'] = tuple(seg)

    # ---- stage B: branch1/2/3 middle convs, block-diagonal ----
    w_list, b_list, seg, row = [], [], [], 0
    for name in ('branch1', 'branch2', 'branch3'):
        wm, bv = fold(params[name][1])
        wm, bv, o, op = pad_rows(wm, bv)
        w_list.append(wm); b_list.append(bv)
        seg.append((row, o)); row += op
    packed['w_mid'] = _block_diag(w_list).astype(compute_dtype)
    packed['b_mid'] = jnp.concatenate(b_list, 0).reshape(-1, 1)
    meta['mid_seg'] = tuple(seg)

    # ---- stage C: branch3 second middle conv ----
    wm, bv = fold(params['branch3'][2])
    wm, bv, o, _ = pad_rows(wm, bv)
    packed['w_mid3'] = wm.astype(compute_dtype)
    packed['b_mid3'] = bv.reshape(-1, 1)
    meta['mid3_rows'] = o

    # ---- final: (ConvLinear*scale) ∘ blockdiag(tails)  |  shortcut ---------
    # Exact algebraic fold (all tails, ConvLinear and shortcut have relu=False);
    # the W_cl @ W_tails product is done in f32 BEFORE any bf16 cast.
    tail_w, tail_b = [], []
    for name, li in (('branch0', 1), ('branch1', 2), ('branch2', 2), ('branch3', 3)):
        wm, bv = fold(params[name][li])      # NO row padding: rows feed W_cl
        tail_w.append(wm); tail_b.append(bv)
    w_tails = _block_diag(tail_w)                       # (4*inter, 36*inter)
    b_tails = jnp.concatenate(tail_b, 0)
    w_cl, b_cl = fold(params['conv_linear'][0], extra_scale=scale)
    w_sc, b_sc = fold(params['shortcut'][0])
    w_fused = jnp.dot(w_cl, w_tails)                    # f32 exact fold
    packed['w_final'] = jnp.concatenate([w_fused, w_sc], axis=1).astype(compute_dtype)
    packed['b_final'] = (jnp.dot(w_cl, b_tails) + b_cl + b_sc).reshape(-1, 1)
    return packed, meta


# ----------------------------------------------------------------------------
# BasicRFB_s configuration / parameters / forward
# ----------------------------------------------------------------------------
def rfb_s_config(in_planes, out_planes, stride=1):
    inter = in_planes // 4

    def c(ic, oc, kh, kw, s=(1, 1), p=(0, 0), d=(1, 1), relu=True):
        return dict(in_c=ic, out_c=oc, kh=kh, kw=kw,
                    stride=s, padding=p, dilation=d, relu=relu)

    return dict(
        branch0=[c(in_planes, inter, 1, 1),
                 c(inter, inter, 3, 3, p=(1, 1), relu=False)],
        branch1=[c(in_planes, inter, 1, 1),
                 c(inter, inter, 3, 1, p=(1, 0)),
                 c(inter, inter, 3, 3, p=(3, 3), d=(3, 3), relu=False)],
        branch2=[c(in_planes, inter, 1, 1),
                 c(inter, inter, 1, 3, s=(stride, stride), p=(0, 1)),
                 c(inter, inter, 3, 3, p=(3, 3), d=(3, 3), relu=False)],
        branch3=[c(in_planes, inter // 2, 1, 1),
                 c(inter // 2, inter // 4 * 3, 1, 3, p=(0, 1)),
                 c(inter // 4 * 3, inter, 3, 1, s=(stride, stride), p=(1, 0)),
                 c(inter, inter, 3, 3, p=(5, 5), d=(5, 5), relu=False)],
        conv_linear=[c(4 * inter, out_planes, 1, 1, relu=False)],
        shortcut=[c(in_planes, out_planes, 1, 1, s=(stride, stride), relu=False)],
    )


def make_conv_params(key, in_c, out_c, kh, kw):
    k1, k2, k3, k4, k5 = jax.random.split(key, 5)
    fan_in = in_c * kh * kw
    return dict(
        w=jax.random.normal(k1, (out_c, in_c, kh, kw), jnp.float32) / jnp.sqrt(fan_in),
        gamma=jax.random.uniform(k2, (out_c,), jnp.float32, 0.5, 1.5),
        beta=jax.random.normal(k3, (out_c,), jnp.float32) * 0.1,
        mean=jax.random.normal(k4, (out_c,), jnp.float32) * 0.1,
        var=jax.random.uniform(k5, (out_c,), jnp.float32, 0.5, 1.5),
    )


def init_rfb_params(key, cfg):
    params = {}
    total = sum(len(v) for v in cfg.values())
    keys = jax.random.split(key, total)
    i = 0
    for name, layers in cfg.items():
        plist = []
        for lc in layers:
            plist.append(make_conv_params(keys[i], lc['in_c'], lc['out_c'],
                                          lc['kh'], lc['kw']))
            i += 1
        params[name] = plist
    return params


def basic_rfb_s_forward(x_nchw, packed, meta, cfg, compute_dtype=jnp.float32):
    N, C, H, W = x_nchw.shape
    M = N * H * W
    cdt = compute_dtype

    for layers in cfg.values():
        for lc in layers:
            assert lc['stride'] == (1, 1), "fused BasicRFB_s path assumes stride=1"

    x_flat = jnp.transpose(x_nchw, (1, 0, 2, 3)).astype(cdt).reshape(C, M)

    def as4d(t):
        return t.reshape(t.shape[0], N, H, W)

    def patches_for(t, name, li):
        lc = cfg[name][li]
        p, Ho, Wo = extract_patches_cm(as4d(t), lc['kh'], lc['kw'],
                                       *lc['stride'], *lc['padding'], *lc['dilation'])
        assert Ho == H and Wo == W
        return p

    # ---- stage A: four 1x1 branch stems, one O-concat matmul (full ReLU) ----
    y = matmul_bias_relu(packed['w_stem'], x_flat, packed['b_stem'])
    s0, s1, s2, s3 = (y[r:r + n] for (r, n) in meta['stem_seg'])

    # ---- stage B: branch1/2/3 middle convs, block-diagonal matmul ----
    pb = [patches_for(s1, 'branch1', 1),
          patches_for(s2, 'branch2', 1),
          patches_for(s3, 'branch3', 1)]
    mid = matmul_bias_relu(packed['w_mid'], jnp.concatenate(pb, 0), packed['b_mid'])
    m1, m2, t3 = (mid[r:r + n] for (r, n) in meta['mid_seg'])

    # ---- stage C: branch3's second middle conv (depends on stage B) ----
    p3 = patches_for(t3, 'branch3', 2)
    m3 = matmul_bias_relu(packed['w_mid3'], p3, packed['b_mid3'])[:meta['mid3_rows']]

    # ---- final stage: tails + ConvLinear*scale + shortcut + ReLU, ONE matmul ----
    pt = [patches_for(s0, 'branch0', 1),
          patches_for(m1, 'branch1', 2),
          patches_for(m2, 'branch2', 2),
          patches_for(m3, 'branch3', 3)]
    a_final = jnp.concatenate(pt + [x_flat], axis=0)     # shortcut folded in
    out = matmul_bias_relu(packed['w_final'], a_final, packed['b_final'],
                           out_dtype=jnp.float32)

    O = out.shape[0]
    return jnp.transpose(out.reshape(O, N, H, W), (1, 0, 2, 3))   # back to NCHW


# ----------------------------------------------------------------------------
# pure-JAX reference (lax.conv) for correctness checks
# ----------------------------------------------------------------------------
def ref_conv_bn(x, p, lc):
    w_hwio = jnp.transpose(p['w'], (2, 3, 1, 0))
    y = lax.conv_general_dilated(
        x, w_hwio,
        window_strides=lc['stride'],
        padding=[(lc['padding'][0],) * 2, (lc['padding'][1],) * 2],
        rhs_dilation=lc['dilation'],
        dimension_numbers=('NHWC', 'HWIO', 'NHWC'))
    s = p['gamma'] / jnp.sqrt(p['var'] + 1e-5)
    y = y * s + (p['beta'] - p['mean'] * s)
    if lc['relu']:
        y = jnp.maximum(y, 0.0)
    return y


def ref_forward(x_nchw, params, cfg, scale=1.0):
    x = jnp.transpose(x_nchw, (0, 2, 3, 1)).astype(jnp.float32)

    def run_seq(name, inp):
        y = inp
        for lc, lp in zip(cfg[name], params[name]):
            y = ref_conv_bn(y, lp, lc)
        return y

    outs = [run_seq(n, x) for n in ('branch0', 'branch1', 'branch2', 'branch3')]
    out = jnp.concatenate(outs, axis=-1)
    out = ref_conv_bn(out, params['conv_linear'][0], cfg['conv_linear'][0])
    short = ref_conv_bn(x, params['shortcut'][0], cfg['shortcut'][0])
    out = jnp.maximum(out * scale + short, 0.0)
    return jnp.transpose(out, (0, 3, 1, 2))


# ----------------------------------------------------------------------------
if __name__ == "__main__":
    key = jax.random.PRNGKey(0)
    kx, kp = jax.random.split(key)

    # in_planes must be >= 16 so branch3's inter//2 and inter//4*3 are nonzero
    in_planes, out_planes, stride, scale = 16, 16, 1, 1.0
    N, H, W = 2, 16, 16

    x = jax.random.normal(kx, (N, in_planes, H, W), jnp.float32)   # NCHW input
    cfg = rfb_s_config(in_planes, out_planes, stride)
    params = init_rfb_params(kp, cfg)

    # One-time weight packing (outside the jitted forward).
    packed_f32, meta_f32 = prepare_params(params, cfg, scale, jnp.float32)
    packed_bf16, meta_bf16 = prepare_params(params, cfg, scale, jnp.bfloat16)

    @jax.jit
    def fwd_f32(x, packed):
        return basic_rfb_s_forward(x, packed, meta_f32, cfg,
                                   compute_dtype=jnp.float32)

    @jax.jit
    def fwd_bf16(x, packed):
        return basic_rfb_s_forward(x, packed, meta_bf16, cfg,
                                   compute_dtype=jnp.bfloat16)

    out = jax.block_until_ready(fwd_f32(x, packed_f32))
    assert out.shape == (N, out_planes, H, W)

    ref = jax.block_until_ready(ref_forward(x, params, cfg, scale))
    np.testing.assert_allclose(np.asarray(out), np.asarray(ref),
                               rtol=1e-3, atol=1e-3)

    # bf16 compute path (f32 MXU accumulation): loose sanity check vs f32 ref
    out_bf16 = jax.block_until_ready(fwd_bf16(x, packed_bf16))
    np.testing.assert_allclose(np.asarray(out_bf16), np.asarray(ref),
                               rtol=1e-1, atol=1e-1)

    print("KERNEL_OK")
</pallas_src>

<mosaic_0001>
module attributes {stable_mosaic.version = 11 : i64} {
  func.func @_mm_bias_relu_kernel(%arg0: i32, %arg1: memref<32x16xf32, #tpu.memory_space<vmem>>, %arg2: memref<16x512xf32, #tpu.memory_space<vmem>>, %arg3: memref<32x1xf32, #tpu.memory_space<vmem>>, %arg4: memref<32x512xf32, #tpu.memory_space<vmem>>) attributes {dimension_semantics = [#tpu.dimension_semantics<parallel>], iteration_bounds = array<i64: 1>, scalar_prefetch = 0 : i64, scratch_operands = 0 : i64, tpu.core_type = #tpu.core_type<tc>, window_params = [{pipeline_mode = #tpu.pipeline_mode<synchronous>, transform_indices = @transform_0, window_bounds = array<i64: 32, 16>}, {transform_indices = @transform_1, window_bounds = array<i64: 16, 512>}, {pipeline_mode = #tpu.pipeline_mode<synchronous>, transform_indices = @transform_2, window_bounds = array<i64: 32, 1>}, {transform_indices = @transform_3, window_bounds = array<i64: 32, 512>}]} {
    %c0 = arith.constant 0 : index
    %c0_0 = arith.constant 0 : index
    %0 = vector.load %arg1[%c0, %c0_0] : memref<32x16xf32, #tpu.memory_space<vmem>>, vector<32x16xf32>
    %c0_1 = arith.constant 0 : index
    %c0_2 = arith.constant 0 : index
    %1 = vector.load %arg2[%c0_1, %c0_2] : memref<16x512xf32, #tpu.memory_space<vmem>>, vector<16x512xf32>
    %cst = arith.constant dense<0.000000e+00> : vector<32x512xf32>
    %2 = tpu.matmul %0, %1, %cst {dimension_numbers = #tpu.dot_dimension_numbers<[1], [0], [0], [1], [0, 0, 1, 1], [], []>} : vector<32x16xf32>, vector<16x512xf32>, vector<32x512xf32> -> vector<32x512xf32>
    %c0_3 = arith.constant 0 : index
    %c0_4 = arith.constant 0 : index
    %3 = vector.load %arg3[%c0_3, %c0_4] : memref<32x1xf32, #tpu.memory_space<vmem>>, vector<32x1xf32>
    %4 = vector.broadcast %3 : vector<32x1xf32> to vector<32x512xf32>
    %5 = arith.addf %2, %4 : vector<32x512xf32>
    %cst_5 = arith.constant 0.000000e+00 : f32
    %6 = vector.broadcast %cst_5 : f32 to vector<32x512xf32>
    %7 = arith.maximumf %5, %6 : vector<32x512xf32>
    %c0_6 = arith.constant 0 : index
    %c0_7 = arith.constant 0 : index
    %8 = vector.load %arg4[%c0_6, %c0_7] : memref<32x512xf32, #tpu.memory_space<vmem>>, vector<32x512xf32>
    tpu.vector_store %arg4[%c0_6, %c0_7], %7 {strides = array<i32>} : memref<32x512xf32, #tpu.memory_space<vmem>>, vector<32x512xf32>,
    return
  }
  func.func @transform_0(%arg0: i32) -> (i32, i32) {
    %c0_i32 = arith.constant 0 : i32
    %c0_i32_0 = arith.constant 0 : i32
    %c0_i32_1 = arith.constant 0 : i32
    return %c0_i32, %c0_i32_0 : i32, i32
  }
  func.func @transform_1(%arg0: i32) -> (i32, i32) {
    %c0_i32 = arith.constant 0 : i32
    %c0_i32_0 = arith.constant 0 : i32
    return %c0_i32, %arg0 : i32, i32
  }
  func.func @transform_2(%arg0: i32) -> (i32, i32) {
    %c0_i32 = arith.constant 0 : i32
    %c0_i32_0 = arith.constant 0 : i32
    %c0_i32_1 = arith.constant 0 : i32
    return %c0_i32, %c0_i32_0 : i32, i32
  }
  func.func @transform_3(%arg0: i32) -> (i32, i32) {
    %c0_i32 = arith.constant 0 : i32
    %c0_i32_0 = arith.constant 0 : i32
    return %c0_i32, %arg0 : i32, i32
  }
}

module attributes {stable_mosaic.version = 11 : i64} {
  func.func @_mm_bias_relu_kernel(%arg0: i32, %arg1: memref<24x30xf32, #tpu.memory_space<vmem>>, %arg2: memref<30x512xf32, #tpu.memory_space<vmem>>, %arg3: memref<24x1xf32, #tpu.memory_space<vmem>>, %arg4: memref<24x512xf32, #tpu.memory_space<vmem>>) attributes {dimension_semantics = [#tpu.dimension_semantics<parallel>], iteration_bounds = array<i64: 1>, scalar_prefetch = 0 : i64, scratch_operands = 0 : i64, tpu.core_type = #tpu.core_type<tc>, window_params = [{pipeline_mode = #tpu.pipeline_mode<synchronous>, transform_indices = @transform_0, window_bounds = array<i64: 24, 30>}, {transform_indices = @transform_1, window_bounds = array<i64: 30, 512>}, {pipeline_mode = #tpu.pipeline_mode<synchronous>, transform_indices = @transform_2, window_bounds = array<i64: 24, 1>}, {transform_indices = @transform_3, window_bounds = array<i64: 24, 512>}]} {
    %c0 = arith.constant 0 : index
    %c0_0 = arith.constant 0 : index
    %0 = vector.load %arg1[%c0, %c0_0] : memref<24x30xf32, #tpu.memory_space<vmem>>, vector<24x30xf32>
    %c0_1 = arith.constant 0 : index
    %c0_2 = arith.constant 0 : index
    %1 = vector.load %arg2[%c0_1, %c0_2] : memref<30x512xf32, #tpu.memory_space<vmem>>, vector<30x512xf32>
    %cst = arith.constant dense<0.000000e+00> : vector<24x512xf32>
    %2 = tpu.matmul %0, %1, %cst {dimension_numbers = #tpu.dot_dimension_numbers<[1], [0], [0], [1], [0, 0, 1, 1], [], []>} : vector<24x30xf32>, vector<30x512xf32>, vector<24x512xf32> -> vector<24x512xf32>
    %c0_3 = arith.constant 0 : index
    %c0_4 = arith.constant 0 : index
    %3 = vector.load %arg3[%c0_3, %c0_4] : memref<24x1xf32, #tpu.memory_space<vmem>>, vector<24x1xf32>
    %4 = vector.broadcast %3 : vector<24x1xf32> to vector<24x512xf32>
    %5 = arith.addf %2, %4 : vector<24x512xf32>
    %cst_5 = arith.constant 0.000000e+00 : f32
    %6 = vector.broadcast %cst_5 : f32 to vector<24x512xf32>
    %7 = arith.maximumf %5, %6 : vector<24x512xf32>
    %c0_6 = arith.constant 0 : index
    %c0_7 = arith.constant 0 : index
    %8 = vector.load %arg4[%c0_6, %c0_7] : memref<24x512xf32, #tpu.memory_space<vmem>>, vector<24x512xf32>
    tpu.vector_store %arg4[%c0_6, %c0_7], %7 {strides = array<i32>} : memref<24x512xf32, #tpu.memory_space<vmem>>, vector<24x512xf32>,
    return
  }
  func.func @transform_0(%arg0: i32) -> (i32, i32) {
    %c0_i32 = arith.constant 0 : i32
    %c0_i32_0 = arith.constant 0 : i32
    %c0_i32_1 = arith.constant 0 : i32
    return %c0_i32, %c0_i32_0 : i32, i32
  }
  func.func @transform_1(%arg0: i32) -> (i32, i32) {
    %c0_i32 = arith.constant 0 : i32
    %c0_i32_0 = arith.constant 0 : i32
    return %c0_i32, %arg0 : i32, i32
  }
  func.func @transform_2(%arg0: i32) -> (i32, i32) {
    %c0_i32 = arith.constant 0 : i32
    %c0_i32_0 = arith.constant 0 : i32
    %c0_i32_1 = arith.constant 0 : i32
    return %c0_i32, %c0_i32_0 : i32, i32
  }
  func.func @transform_3(%arg0: i32) -> (i32, i32) {
    %c0_i32 = arith.constant 0 : i32
    %c0_i32_0 = arith.constant 0 : i32
    return %c0_i32, %arg0 : i32, i32
  }
}

module attributes {stable_mosaic.version = 11 : i64} {
  func.func @_mm_bias_relu_kernel(%arg0: i32, %arg1: memref<8x9xf32, #tpu.memory_space<vmem>>, %arg2: memref<9x512xf32, #tpu.memory_space<vmem>>, %arg3: memref<8x1xf32, #tpu.memory_space<vmem>>, %arg4: memref<8x512xf32, #tpu.memory_space<vmem>>) attributes {dimension_semantics = [#tpu.dimension_semantics<parallel>], iteration_bounds = array<i64: 1>, scalar_prefetch = 0 : i64, scratch_operands = 0 : i64, tpu.core_type = #tpu.core_type<tc>, window_params = [{pipeline_mode = #tpu.pipeline_mode<synchronous>, transform_indices = @transform_0, window_bounds = array<i64: 8, 9>}, {transform_indices = @transform_1, window_bounds = array<i64: 9, 512>}, {pipeline_mode = #tpu.pipeline_mode<synchronous>, transform_indices = @transform_2, window_bounds = array<i64: 8, 1>}, {transform_indices = @transform_3, window_bounds = array<i64: 8, 512>}]} {
    %c0 = arith.constant 0 : index
    %c0_0 = arith.constant 0 : index
    %0 = vector.load %arg1[%c0, %c0_0] : memref<8x9xf32, #tpu.memory_space<vmem>>, vector<8x9xf32>
    %c0_1 = arith.constant 0 : index
    %c0_2 = arith.constant 0 : index
    %1 = vector.load %arg2[%c0_1, %c0_2] : memref<9x512xf32, #tpu.memory_space<vmem>>, vector<9x512xf32>
    %cst = arith.constant dense<0.000000e+00> : vector<8x512xf32>
    %2 = tpu.matmul %0, %1, %cst {dimension_numbers = #tpu.dot_dimension_numbers<[1], [0], [0], [1], [0, 0, 1, 1], [], []>} : vector<8x9xf32>, vector<9x512xf32>, vector<8x512xf32> -> vector<8x512xf32>
    %c0_3 = arith.constant 0 : index
    %c0_4 = arith.constant 0 : index
    %3 = vector.load %arg3[%c0_3, %c0_4] : memref<8x1xf32, #tpu.memory_space<vmem>>, vector<8x1xf32>
    %4 = vector.broadcast %3 : vector<8x1xf32> to vector<8x512xf32>
    %5 = arith.addf %2, %4 : vector<8x512xf32>
    %cst_5 = arith.constant 0.000000e+00 : f32
    %6 = vector.broadcast %cst_5 : f32 to vector<8x512xf32>
    %7 = arith.maximumf %5, %6 : vector<8x512xf32>
    %c0_6 = arith.constant 0 : index
    %c0_7 = arith.constant 0 : index
    %8 = vector.load %arg4[%c0_6, %c0_7] : memref<8x512xf32, #tpu.memory_space<vmem>>, vector<8x512xf32>
    tpu.vector_store %arg4[%c0_6, %c0_7], %7 {strides = array<i32>} : memref<8x512xf32, #tpu.memory_space<vmem>>, vector<8x512xf32>,
    return
  }
  func.func @transform_0(%arg0: i32) -> (i32, i32) {
    %c0_i32 = arith.constant 0 : i32
    %c0_i32_0 = arith.constant 0 : i32
    %c0_i32_1 = arith.constant 0 : i32
    return %c0_i32, %c0_i32_0 : i32, i32
  }
  func.func @transform_1(%arg0: i32) -> (i32, i32) {
    %c0_i32 = arith.constant 0 : i32
    %c0_i32_0 = arith.constant 0 : i32
    return %c0_i32, %arg0 : i32, i32
  }
  func.func @transform_2(%arg0: i32) -> (i32, i32) {
    %c0_i32 = arith.constant 0 : i32
    %c0_i32_0 = arith.constant 0 : i32
    %c0_i32_1 = arith.constant 0 : i32
    return %c0_i32, %c0_i32_0 : i32, i32
  }
  func.func @transform_3(%arg0: i32) -> (i32, i32) {
    %c0_i32 = arith.constant 0 : i32
    %c0_i32_0 = arith.constant 0 : i32
    return %c0_i32, %arg0 : i32, i32
  }
}

module attributes {stable_mosaic.version = 11 : i64} {
  func.func @_mm_bias_relu_kernel(%arg0: i32, %arg1: memref<16x160xf32, #tpu.memory_space<vmem>>, %arg2: memref<160x512xf32, #tpu.memory_space<vmem>>, %arg3: memref<16x1xf32, #tpu.memory_space<vmem>>, %arg4: memref<16x512xf32, #tpu.memory_space<vmem>>) attributes {dimension_semantics = [#tpu.dimension_semantics<parallel>], iteration_bounds = array<i64: 1>, scalar_prefetch = 0 : i64, scratch_operands = 0 : i64, tpu.core_type = #tpu.core_type<tc>, window_params = [{pipeline_mode = #tpu.pipeline_mode<synchronous>, transform_indices = @transform_0, window_bounds = array<i64: 16, 160>}, {transform_indices = @transform_1, window_bounds = array<i64: 160, 512>}, {pipeline_mode = #tpu.pipeline_mode<synchronous>, transform_indices = @transform_2, window_bounds = array<i64: 16, 1>}, {transform_indices = @transform_3, window_bounds = array<i64: 16, 512>}]} {
    %c0 = arith.constant 0 : index
    %c0_0 = arith.constant 0 : index
    %0 = vector.load %arg1[%c0, %c0_0] : memref<16x160xf32, #tpu.memory_space<vmem>>, vector<16x160xf32>
    %c0_1 = arith.constant 0 : index
    %c0_2 = arith.constant 0 : index
    %1 = vector.load %arg2[%c0_1, %c0_2] : memref<160x512xf32, #tpu.memory_space<vmem>>, vector<160x512xf32>
    %cst = arith.constant dense<0.000000e+00> : vector<16x512xf32>
    %2 = tpu.matmul %0, %1, %cst {dimension_numbers = #tpu.dot_dimension_numbers<[1], [0], [0], [1], [0, 0, 1, 1], [], []>} : vector<16x160xf32>, vector<160x512xf32>, vector<16x512xf32> -> vector<16x512xf32>
    %c0_3 = arith.constant 0 : index
    %c0_4 = arith.constant 0 : index
    %3 = vector.load %arg3[%c0_3, %c0_4] : memref<16x1xf32, #tpu.memory_space<vmem>>, vector<16x1xf32>
    %4 = vector.broadcast %3 : vector<16x1xf32> to vector<16x512xf32>
    %5 = arith.addf %2, %4 : vector<16x512xf32>
    %cst_5 = arith.constant 0.000000e+00 : f32
    %6 = vector.broadcast %cst_5 : f32 to vector<16x512xf32>
    %7 = arith.maximumf %5, %6 : vector<16x512xf32>
    %c0_6 = arith.constant 0 : index
    %c0_7 = arith.constant 0 : index
    %8 = vector.load %arg4[%c0_6, %c0_7] : memref<16x512xf32, #tpu.memory_space<vmem>>, vector<16x512xf32>
    tpu.vector_store %arg4[%c0_6, %c0_7], %7 {strides = array<i32>} : memref<16x512xf32, #tpu.memory_space<vmem>>, vector<16x512xf32>,
    return
  }
  func.func @transform_0(%arg0: i32) -> (i32, i32) {
    %c0_i32 = arith.constant 0 : i32
    %c0_i32_0 = arith.constant 0 : i32
    %c0_i32_1 = arith.constant 0 : i32
    return %c0_i32, %c0_i32_0 : i32, i32
  }
  func.func @transform_1(%arg0: i32) -> (i32, i32) {
    %c0_i32 = arith.constant 0 : i32
    %c0_i32_0 = arith.constant 0 : i32
    return %c0_i32, %arg0 : i32, i32
  }
  func.func @transform_2(%arg0: i32) -> (i32, i32) {
    %c0_i32 = arith.constant 0 : i32
    %c0_i32_0 = arith.constant 0 : i32
    %c0_i32_1 = arith.constant 0 : i32
    return %c0_i32, %c0_i32_0 : i32, i32
  }
  func.func @transform_3(%arg0: i32) -> (i32, i32) {
    %c0_i32 = arith.constant 0 : i32
    %c0_i32_0 = arith.constant 0 : i32
    return %c0_i32, %arg0 : i32, i32
  }
}

</mosaic_0001>

<bundles_post_ra>
// kernel: fwd_f32.4
= control target key start
LH: loop header
LB: loop body
LE: loop exit
PB: predicated region body
PF: predicated region fallthrough
CT: control target
= control target key end

     0   :  { %v297_v3 = vmov 0.0   ;;  %v298_v8 = vmov 0   ;;  %vm50_vm0 = vcmask 130048   ;;  %s423_s1 = inlined_call_operand.vmem [shape: f32[16,512], index: 1, kind: input, shape index: {}]   ;;  %s424_s0 = inlined_call_operand.vmem [shape: f32[32,16], index: 0, kind: input, shape index: {}]   ;;  %s425_s2 = inlined_call_operand.vmem [shape: f32[32,1], index: 2, kind: input, shape index: {}]   ;;  %s426_s3 = inlined_call_operand.vmem [shape: f32[32,512], index: 3, kind: output, shape index: {}]  }
   0x1   :  { %v19_v0 = vld [vmem:[%s423_s1 + $0x8] sm:$0xff]  ;;  %v21_v2 = vld [vmem:[%s423_s1 + $0x18] sm:$0xff]  ;;  %127 = vmatprep.mubr.f32.mxu0 %v297_v3  ;;  %216 = vmatprep.mubr.f32.mxu1 %v297_v3  ;;  %v18_v6 = vld [vmem:[%s423_s1] sm:$0xff] }
   0x2   :  { %v23_v1 = vld [vmem:[%s423_s1 + $0x28] sm:$0xff]  ;;  %v25_v5 = vld [vmem:[%s423_s1 + $0x38] sm:$0xff]  ;;  %v22_v7 = vld [vmem:[%s423_s1 + $0x20] sm:$0xff]  ;;  %295 = vset.pattern.permute.xlu0 %v298_v8  ;;  %296 = vset.pattern.permute.xlu1 %v298_v8 }
   0x3   :  { %v285_v4 = vpack.c.bf16 %v23_v1, %v19_v0  ;;  %v289_v9 = vpack.c.bf16 %v25_v5, %v21_v2  ;;  %v287_v10 = vpack.c.bf16 %v22_v7, %v18_v6  ;;  %v20_v11 = vld [vmem:[%s423_s1 + $0x10] sm:$0xff]  ;;  %v14_v14 = vld [vmem:[%s424_s0] sm:$0xff]  ;;  %v27_v17 = vld [vmem:[%s425_s2 + $0x8] sm:$0xff] }
   0x4   :  { %v24_v12 = vld [vmem:[%s423_s1 + $0x30] sm:$0xff]  ;;  %v26_v15 = vld [vmem:[%s425_s2] sm:$0xff]  ;;  %v29_v18 = vld [vmem:[%s425_s2 + $0x18] sm:$0xff] }
   0x5   :  { %286 = vmatprep.subr.bf16.mxu0 %v285_v4  ;;  %v291_v13 = vpack.c.bf16 %v24_v12, %v20_v11  ;;  %290 = vmatprep.subr.bf16.mxu1 %v289_v9  ;;  %v28_v16 = vld [vmem:[%s425_s2 + $0x10] sm:$0xff]  ;;  %v15_v19 = vld [vmem:[%s424_s0 + $0x8] sm:$0xff]  ;;  %v17_v21 = vld [vmem:[%s424_s0 + $0x18] sm:$0xff] }
   0x6   :  { %288 = vmatpush1.bf16.msra.mxu0 %v287_v10  ;;  %32 = vperm.xlu0 %295, %v26_v15   ;;  %v16_v20 = vld [vmem:[%s424_s0 + $0x10] sm:$0xff] }
   0x7   :  { %292 = vmatpush1.bf16.msra.mxu1 %v291_v13  ;;  %42 = vperm.xlu1 %296, %v28_v16  }
   0x9   :  { %277 = vmatmul.mubr.msk.f32.vlgmr.msra.gmra.mrb[0].mxu0 %vm50_vm0, %v14_v14 }
   0xa   :  { %281 = vmatmul.mubr.msk.f32.vlgmr.msra.gmra.mrb[0].mxu1 %vm50_vm0, %v14_v14  ;;  %133 = vmatprep.mubr.f32.mxu0 %v297_v3 }
   0xb   :  { %222 = vmatprep.mubr.f32.mxu1 %v297_v3  ;;  %37 = vperm.xlu0 %295, %v27_v17  }
   0xc   :  { %47 = vperm.xlu1 %296, %v29_v18  }
   0xd   :  { %278 = vmatmul.mubr.msk.f32.gmra.mrb[2].mxu0 %vm50_vm0, %v15_v19 }
   0xe   :  { %282 = vmatmul.mubr.msk.f32.gmra.mrb[2].mxu1 %vm50_vm0, %v15_v19  ;;  %139 = vmatprep.mubr.f32.mxu0 %v297_v3 }
   0xf   :  { %228 = vmatprep.mubr.f32.mxu1 %v297_v3 }
  0x11   :  { %279 = vmatmul.mubr.msk.f32.gmra.mrb[4].mxu0 %vm50_vm0, %v16_v20 }
  0x12   :  { %283 = vmatmul.mubr.msk.f32.gmra.mrb[4].mxu1 %vm50_vm0, %v16_v20  ;;  %145 = vmatprep.mubr.f32.mxu0 %v297_v3 }
  0x13   :  { %234 = vmatprep.mubr.f32.mxu1 %v297_v3 }
  0x15   :  { %280 = vmatmul.mubr.msk.f32.gmra.mrb[6].mxu0 %vm50_vm0, %v17_v21 }
  0x16   :  { %284 = vmatmul.mubr.msk.f32.gmra.mrb[6].mxu1 %vm50_vm0, %v17_v21 }
  0x85   :  { %v33_v22 = vpop.permute.xlu0 %32 }
  0x86   :  { %v43_v41 = vpop.permute.xlu1 %42 }
  0x8a   :  { %v38_v30 = vpop.permute.xlu0 %37 }
  0x8b   :  { %v48_v59 = vpop.permute.xlu1 %47 }
  0xdc   :  { %v129_v23 = vpop.f32.mrb[0].mxu0 }
  0xdd   :  { %v130_v24 = vadd.f32 %v129_v23, %v33_v22  ;;  %v218_v25 = vpop.f32.mrb[0].mxu1  ;;  %v131_v26 = vpop.f32.mrb[1].mxu0 }
  0xde   :  { %v219_v27 = vadd.f32 %v218_v25, %v33_v22  ;;  %v132_v28 = vadd.f32 %v131_v26, %v33_v22  ;;  %v220_v29 = vpop.f32.mrb[1].mxu1 }
  0xdf   :  { %v241_v31 = vmax.f32 %v130_v24, 0.0  ;;  %v221_v32 = vadd.f32 %v220_v29, %v33_v22 }
  0xe0   :  { %v243_v33 = vmax.f32 %v219_v27, 0.0  ;;  %v242_v34 = vmax.f32 %v132_v28, 0.0  ;;  %v135_v35 = vpop.f32.mrb[2].mxu0 }
  0xe1   :  { %257 = vst [vmem:[%s426_s3] sm:$0xff] %v241_v31  ;;  %v244_v36 = vmax.f32 %v221_v32, 0.0  ;;  %v136_v37 = vadd.f32 %v135_v35, %v38_v30  ;;  %v224_v38 = vpop.f32.mrb[2].mxu1  ;;  %v137_v39 = vpop.f32.mrb[3].mxu0 }
  0xe2   :  { %259 = vst [vmem:[%s426_s3 + $0x10] sm:$0xff] %v243_v33  ;;  %258 = vst [vmem:[%s426_s3 + $0x8] sm:$0xff] %v242_v34  ;;  %v225_v40 = vadd.f32 %v224_v38, %v38_v30  ;;  %v138_v42 = vadd.f32 %v137_v39, %v38_v30  ;;  %v226_v43 = vpop.f32.mrb[3].mxu1 }
  0xe3   :  { %260 = vst [vmem:[%s426_s3 + $0x18] sm:$0xff] %v244_v36  ;;  %v245_v44 = vmax.f32 %v136_v37, 0.0  ;;  %v227_v45 = vadd.f32 %v226_v43, %v38_v30 }
  0xe4   :  { %v247_v46 = vmax.f32 %v225_v40, 0.0  ;;  %v246_v47 = vmax.f32 %v138_v42, 0.0  ;;  %v141_v48 = vpop.f32.mrb[4].mxu0 }
  0xe5   :  { %261 = vst [vmem:[%s426_s3 + $0x20] sm:$0xff] %v245_v44  ;;  %v248_v49 = vmax.f32 %v227_v45, 0.0  ;;  %v142_v50 = vadd.f32 %v141_v48, %v43_v41  ;;  %v230_v51 = vpop.f32.mrb[4].mxu1  ;;  %v143_v52 = vpop.f32.mrb[5].mxu0 }
  0xe6   :  { %263 = vst [vmem:[%s426_s3 + $0x30] sm:$0xff] %v247_v46  ;;  %262 = vst [vmem:[%s426_s3 + $0x28] sm:$0xff] %v246_v47  ;;  %v231_v53 = vadd.f32 %v230_v51, %v43_v41  ;;  %v144_v54 = vadd.f32 %v143_v52, %v43_v41  ;;  %v232_v55 = vpop.f32.mrb[5].mxu1 }
  0xe7   :  { %264 = vst [vmem:[%s426_s3 + $0x38] sm:$0xff] %v248_v49  ;;  %v249_v56 = vmax.f32 %v142_v50, 0.0  ;;  %v233_v57 = vadd.f32 %v232_v55, %v43_v41 }
  0xe8   :  { %v251_v58 = vmax.f32 %v231_v53, 0.0  ;;  %v250_v60 = vmax.f32 %v144_v54, 0.0  ;;  %v147_v61 = vpop.f32.mrb[6].mxu0 }
  0xe9   :  { %265 = vst [vmem:[%s426_s3 + $0x40] sm:$0xff] %v249_v56  ;;  %v252_v62 = vmax.f32 %v233_v57, 0.0  ;;  %v148_v63 = vadd.f32 %v147_v61, %v48_v59  ;;  %v236_v0 = vpop.f32.mrb[6].mxu1  ;;  %v149_v1 = vpop.f32.mrb[7].mxu0 }
  0xea   :  { %267 = vst [vmem:[%s426_s3 + $0x50] sm:$0xff] %v251_v58  ;;  %266 = vst [vmem:[%s426_s3 + $0x48] sm:$0xff] %v250_v60  ;;  %v237_v2 = vadd.f32 %v236_v0, %v48_v59  ;;  %v150_v3 = vadd.f32 %v149_v1, %v48_v59  ;;  %v238_v4 = vpop.f32.mrb[7].mxu1 }
  0xeb   :  { %268 = vst [vmem:[%s426_s3 + $0x58] sm:$0xff] %v252_v62  ;;  %v253_v5 = vmax.f32 %v148_v63, 0.0  ;;  %v239_v6 = vadd.f32 %v238_v4, %v48_v59 }
  0xec   :  { %v255_v7 = vmax.f32 %v237_v2, 0.0  ;;  %v254_v8 = vmax.f32 %v150_v3, 0.0 }
  0xed   :  { %269 = vst [vmem:[%s426_s3 + $0x60] sm:$0xff] %v253_v5  ;;  %v256_v9 = vmax.f32 %v239_v6, 0.0 }
  0xee   :  { %271 = vst [vmem:[%s426_s3 + $0x70] sm:$0xff] %v255_v7  ;;  %270 = vst [vmem:[%s426_s3 + $0x68] sm:$0xff] %v254_v8 }
  0xef   :  { %272 = vst [vmem:[%s426_s3 + $0x78] sm:$0xff] %v256_v9 }

// kernel: fwd_f32.5
= control target key start
LH: loop header
LB: loop body
LE: loop exit
PB: predicated region body
PF: predicated region fallthrough
CT: control target
= control target key end

     0   :  { %vm61_vm0 = vcmask 1045504   ;;  %v303_v3 = vmov 0.0   ;;  %v304_v8 = vmov 0   ;;  %vm305_vm1 = vmmov 1   ;;  %s447_s1 = inlined_call_operand.vmem [shape: f32[30,512], index: 1, kind: input, shape index: {}]   ;;  %s448_s2 = inlined_call_operand.vmem [shape: f32[24,1], index: 2, kind: input, shape index: {}]   ;;  %s449_s0 = inlined_call_operand.vmem [shape: f32[24,30], index: 0, kind: input, shape index: {}]   ;;  %s450_s3 = inlined_call_operand.vmem [shape: f32[24,512], index: 3, kind: output, shape index: {}]  }
   0x1   :  { %v18_v0 = vld [vmem:[%s447_s1 + $0x8] sm:$0xff]  ;;  %v20_v2 = vld [vmem:[%s447_s1 + $0x18] sm:$0xff]  ;;  %138 = vmatprep.mubr.f32.mxu0 %v303_v3  ;;  %221 = vmatprep.mubr.f32.mxu1 %v303_v3  ;;  %v17_v6 = vld [vmem:[%s447_s1] sm:$0xff]  ;;  %vm51_vm3 = vcmask 244736  }
   0x2   :  { %v22_v1 = vld [vmem:[%s447_s1 + $0x28] sm:$0xff]  ;;  %v24_v5 = vld [vmem:[%s447_s1 + $0x38] sm:$0xff]  ;;  %v21_v7 = vld [vmem:[%s447_s1 + $0x20] sm:$0xff]  ;;  %301 = vset.pattern.permute.xlu0 %v304_v8  ;;  %302 = vset.pattern.permute.xlu1 %v304_v8 }
   0x3   :  { %v278_v4 = vpack.c.bf16 %v22_v1, %v18_v0  ;;  %v288_v9 = vpack.c.bf16 %v24_v5, %v20_v2  ;;  %v280_v10 = vpack.c.bf16 %v21_v7, %v17_v6  ;;  %v19_v11 = vld [vmem:[%s447_s1 + $0x10] sm:$0xff]  ;;  %v26_v13 = vld [vmem:[%s447_s1 + $0x48] sm:$0xff]  ;;  %vm357_vm2 = vmpackc.low %vm61_vm0, %vm305_vm1 }
   0x4   :  { %v23_v12 = vld [vmem:[%s447_s1 + $0x30] sm:$0xff]  ;;  %v30_v15 = vld [vmem:[%s447_s1 + $0x68] sm:$0x3f]  ;;  %v28_v17 = vld [vmem:[%s447_s1 + $0x58] sm:$0xff] }
   0x5   :  { %279 = vmatprep.subr.bf16.mxu0 %v278_v4  ;;  %v290_v14 = vpack.c.bf16 %v23_v12, %v19_v11  ;;  %289 = vmatprep.subr.bf16.mxu1 %v288_v9  ;;  %v282_v18 = vpack.c.bf16 %v30_v15, %v26_v13  ;;  %v32_v19 = vld [vmem:[%s447_s1 + $0x78] sm:$0x3f]  ;;  %v25_v20 = vld [vmem:[%s447_s1 + $0x40] sm:$0xff]  ;;  %v27_v24 = vld [vmem:[%s447_s1 + $0x50] sm:$0xff] }
   0x6   :  { %281 = vmatpush1.bf16.msra.mxu0 %v280_v10  ;;  %v29_v21 = vld [vmem:[%s447_s1 + $0x60] sm:$0x3f]  ;;  %v292_v22 = vpack.c.bf16 %v32_v19, %v28_v17  ;;  %v31_v25 = vld [vmem:[%s447_s1 + $0x70] sm:$0x3f]  ;;  %v34_v30 = vld [vmem:[%s448_s2 + $0x8] sm:$0xff] }
   0x7   :  { %291 = vmatpush1.bf16.msra.mxu1 %v290_v14  ;;  %v285_v23 = vpack.c.bf16 %v29_v21, %v25_v20  ;;  %284 = vmatprep.subr.msk.bf16.mxu0 %vm357_vm2, %v282_v18  ;;  %v295_v26 = vpack.c.bf16 %v31_v25, %v27_v24  ;;  %v33_v27 = vld [vmem:[%s448_s2] sm:$0xff]  ;;  %v35_v28 = vld [vmem:[%s448_s2 + $0x10] sm:$0xff]  ;;  %v15_v31 = vld [vmem:[%s449_s0 + $0x8] sm:$0xff] }
   0x8   :  { %294 = vmatprep.subr.msk.bf16.mxu1 %vm357_vm2, %v292_v22  ;;  %38 = vperm.xlu0 %301, %v33_v27   ;;  %v14_v29 = vld [vmem:[%s449_s0] sm:$0xff]  ;;  %v16_v32 = vld [vmem:[%s449_s0 + $0x10] sm:$0xff] }
   0x9   :  { %48 = vperm.xlu1 %302, %v35_v28  }
   0xa   :  { %287 = vmatpush1.bf16.msk.msra.mxu0 %vm357_vm2, %v285_v23 }
   0xb   :  { %297 = vmatpush1.bf16.msk.msra.mxu1 %vm357_vm2, %v295_v26 }
   0xc   :  { %43 = vperm.xlu0 %301, %v34_v30  }
   0xd   :  { %270 = vmatmul.mubr.msk.f32.vlgmr.msra.gmra.mrb[0].mxu0 %vm51_vm3, %v14_v29 }
   0xe   :  { %275 = vmatmul.mubr.msk.f32.vlgmr.msra.gmra.mrb[0].mxu1 %vm51_vm3, %v14_v29  ;;  %144 = vmatprep.mubr.f32.mxu0 %v303_v3 }
   0xf   :  { %227 = vmatprep.mubr.f32.mxu1 %v303_v3 }
  0x11   :  { %271 = vmatmul.mubr.msk.f32.gmra.mrb[2].mxu0 %vm51_vm3, %v15_v31 }
  0x12   :  { %276 = vmatmul.mubr.msk.f32.gmra.mrb[2].mxu1 %vm51_vm3, %v15_v31  ;;  %150 = vmatprep.mubr.f32.mxu0 %v303_v3 }
  0x13   :  { %233 = vmatprep.mubr.f32.mxu1 %v303_v3 }
  0x15   :  { %272 = vmatmul.mubr.msk.f32.gmra.mrb[4].mxu0 %vm51_vm3, %v16_v32 }
  0x16   :  { %277 = vmatmul.mubr.msk.f32.gmra.mrb[4].mxu1 %vm51_vm3, %v16_v32 }
  0x87   :  { %v39_v33 = vpop.permute.xlu0 %38 }
  0x88   :  { %v49_v54 = vpop.permute.xlu1 %48 }
  0x8b   :  { %v44_v41 = vpop.permute.xlu0 %43 }
  0xe0   :  { %v140_v34 = vpop.f32.mrb[0].mxu0 }
  0xe1   :  { %v141_v35 = vadd.f32 %v140_v34, %v39_v33  ;;  %v223_v36 = vpop.f32.mrb[0].mxu1  ;;  %v142_v37 = vpop.f32.mrb[1].mxu0 }
  0xe2   :  { %v224_v38 = vadd.f32 %v223_v36, %v39_v33  ;;  %v143_v39 = vadd.f32 %v142_v37, %v39_v33  ;;  %v225_v40 = vpop.f32.mrb[1].mxu1 }
  0xe3   :  { %v240_v42 = vmax.f32 %v141_v35, 0.0  ;;  %v226_v43 = vadd.f32 %v225_v40, %v39_v33 }
  0xe4   :  { %v242_v44 = vmax.f32 %v224_v38, 0.0  ;;  %v241_v45 = vmax.f32 %v143_v39, 0.0  ;;  %v146_v46 = vpop.f32.mrb[2].mxu0 }
  0xe5   :  { %252 = vst [vmem:[%s450_s3] sm:$0xff] %v240_v42  ;;  %v243_v47 = vmax.f32 %v226_v43, 0.0  ;;  %v147_v48 = vadd.f32 %v146_v46, %v44_v41  ;;  %v229_v49 = vpop.f32.mrb[2].mxu1  ;;  %v148_v50 = vpop.f32.mrb[3].mxu0 }
  0xe6   :  { %254 = vst [vmem:[%s450_s3 + $0x10] sm:$0xff] %v242_v44  ;;  %253 = vst [vmem:[%s450_s3 + $0x8] sm:$0xff] %v241_v45  ;;  %v230_v51 = vadd.f32 %v229_v49, %v44_v41  ;;  %v149_v52 = vadd.f32 %v148_v50, %v44_v41  ;;  %v231_v53 = vpop.f32.mrb[3].mxu1 }
  0xe7   :  { %255 = vst [vmem:[%s450_s3 + $0x18] sm:$0xff] %v243_v47  ;;  %v244_v55 = vmax.f32 %v147_v48, 0.0  ;;  %v232_v56 = vadd.f32 %v231_v53, %v44_v41 }
  0xe8   :  { %v246_v57 = vmax.f32 %v230_v51, 0.0  ;;  %v245_v58 = vmax.f32 %v149_v52, 0.0  ;;  %v152_v59 = vpop.f32.mrb[4].mxu0 }
  0xe9   :  { %256 = vst [vmem:[%s450_s3 + $0x20] sm:$0xff] %v244_v55  ;;  %v247_v60 = vmax.f32 %v232_v56, 0.0  ;;  %v153_v61 = vadd.f32 %v152_v59, %v49_v54  ;;  %v235_v62 = vpop.f32.mrb[4].mxu1  ;;  %v154_v63 = vpop.f32.mrb[5].mxu0 }
  0xea   :  { %258 = vst [vmem:[%s450_s3 + $0x30] sm:$0xff] %v246_v57  ;;  %257 = vst [vmem:[%s450_s3 + $0x28] sm:$0xff] %v245_v58  ;;  %v236_v0 = vadd.f32 %v235_v62, %v49_v54  ;;  %v155_v1 = vadd.f32 %v154_v63, %v49_v54  ;;  %v237_v2 = vpop.f32.mrb[5].mxu1 }
  0xeb   :  { %259 = vst [vmem:[%s450_s3 + $0x38] sm:$0xff] %v247_v60  ;;  %v248_v3 = vmax.f32 %v153_v61, 0.0  ;;  %v238_v4 = vadd.f32 %v237_v2, %v49_v54 }
  0xec   :  { %v250_v5 = vmax.f32 %v236_v0, 0.0  ;;  %v249_v6 = vmax.f32 %v155_v1, 0.0 }
  0xed   :  { %260 = vst [vmem:[%s450_s3 + $0x40] sm:$0xff] %v248_v3  ;;  %v251_v7 = vmax.f32 %v238_v4, 0.0 }
  0xee   :  { %262 = vst [vmem:[%s450_s3 + $0x50] sm:$0xff] %v250_v5  ;;  %261 = vst [vmem:[%s450_s3 + $0x48] sm:$0xff] %v249_v6 }
  0xef   :  { %263 = vst [vmem:[%s450_s3 + $0x58] sm:$0xff] %v251_v7 }

// kernel: fwd_f32.6
= control target key start
LH: loop header
LB: loop body
LE: loop exit
PB: predicated region body
PF: predicated region fallthrough
CT: control target
= control target key end

     0   :  { %vm33_vm0 = vcmask 1040384   ;;  %vm222_vm1 = vmmov 1   ;;  %v223_v3 = vmov 0.0   ;;  %v224_v8 = vmov 0   ;;  %s299_s1 = inlined_call_operand.vmem [shape: f32[9,512], index: 1, kind: input, shape index: {}]   ;;  %s300_s2 = inlined_call_operand.vmem [shape: f32[8,1], index: 2, kind: input, shape index: {}]   ;;  %s301_s0 = inlined_call_operand.vmem [shape: f32[8,9], index: 0, kind: input, shape index: {}]   ;;  %s302_s3 = inlined_call_operand.vmem [shape: f32[8,512], index: 3, kind: output, shape index: {}]  }
   0x1   :  { %v16_v0 = vld [vmem:[%s299_s1 + $0x8] sm:$0xff]  ;;  %vm251_vm2 = vmpackc.low %vm33_vm0, %vm222_vm1  ;;  %110 = vmatprep.mubr.f32.mxu0 %v223_v3  ;;  %181 = vmatprep.mubr.f32.mxu1 %v223_v3  ;;  %v18_v5 = vld [vmem:[%s299_s1 + $0x18] sm:$0xff]  ;;  %vm29_vm3 = vcmask 72704  }
   0x2   :  { %v20_v1 = vld [vmem:[%s299_s1 + $0x28] sm:$0x1]  ;;  %v22_v6 = vld [vmem:[%s299_s1 + $0x38] sm:$0x1]  ;;  %v15_v7 = vld [vmem:[%s299_s1] sm:$0xff]  ;;  %221 = vset.pattern.permute.xlu0 %v224_v8 }
   0x3   :  { %v206_v4 = vpack.c.bf16 %v20_v1, %v16_v0  ;;  %v212_v9 = vpack.c.bf16 %v22_v6, %v18_v5  ;;  %v19_v10 = vld [vmem:[%s299_s1 + $0x20] sm:$0x1]  ;;  %v17_v11 = vld [vmem:[%s299_s1 + $0x10] sm:$0xff] }
   0x4   :  { %v21_v12 = vld [vmem:[%s299_s1 + $0x30] sm:$0x1]  ;;  %v209_v13 = vpack.c.bf16 %v19_v10, %v15_v7  ;;  %v23_v15 = vld [vmem:[%s300_s2] sm:$0xff] }
   0x5   :  { %208 = vmatprep.subr.msk.bf16.mxu0 %vm251_vm2, %v206_v4  ;;  %v215_v14 = vpack.c.bf16 %v21_v12, %v17_v11  ;;  %214 = vmatprep.subr.msk.bf16.mxu1 %vm251_vm2, %v212_v9  ;;  %v14_v16 = vld [vmem:[%s301_s0] sm:$0xff] }
   0x6   :  { %26 = vperm.xlu0 %221, %v23_v15   ;;  %211 = vmatpush1.bf16.msk.msra.mxu0 %vm251_vm2, %v209_v13 }
   0x7   :  { %217 = vmatpush1.bf16.msk.msra.mxu1 %vm251_vm2, %v215_v14 }
   0x9   :  { %202 = vmatmul.mubr.msk.f32.vlgmr.msra.gmra.mrb[0].mxu0 %vm29_vm3, %v14_v16 }
   0xa   :  { %205 = vmatmul.mubr.msk.f32.vlgmr.msra.gmra.mrb[0].mxu1 %vm29_vm3, %v14_v16 }
  0x85   :  { %v27_v17 = vpop.permute.xlu0 %26 }
  0xdc   :  { %v112_v18 = vpop.f32.mrb[0].mxu0 }
  0xdd   :  { %v183_v19 = vpop.f32.mrb[0].mxu1  ;;  %v113_v20 = vadd.f32 %v112_v18, %v27_v17  ;;  %v114_v22 = vpop.f32.mrb[1].mxu0 }
  0xde   :  { %v184_v21 = vadd.f32 %v183_v19, %v27_v17  ;;  %v185_v23 = vpop.f32.mrb[1].mxu1  ;;  %v115_v24 = vadd.f32 %v114_v22, %v27_v17 }
  0xdf   :  { %v186_v25 = vadd.f32 %v185_v23, %v27_v17  ;;  %v188_v26 = vmax.f32 %v113_v20, 0.0 }
  0xe0   :  { %v190_v27 = vmax.f32 %v184_v21, 0.0  ;;  %v189_v28 = vmax.f32 %v115_v24, 0.0 }
  0xe1   :  { %v191_v29 = vmax.f32 %v186_v25, 0.0  ;;  %192 = vst [vmem:[%s302_s3] sm:$0xff] %v188_v26 }
  0xe2   :  { %194 = vst [vmem:[%s302_s3 + $0x10] sm:$0xff] %v190_v27  ;;  %193 = vst [vmem:[%s302_s3 + $0x8] sm:$0xff] %v189_v28 }
  0xe3   :  { %195 = vst [vmem:[%s302_s3 + $0x18] sm:$0xff] %v191_v29 }

// kernel: fwd_f32.7
= control target key start
LH: loop header
LB: loop body
LE: loop exit
PB: predicated region body
PF: predicated region fallthrough
CT: control target
= control target key end

     0   :  { %v377_v3 = vmov 0   ;;  %vm110_vm0 = vcmask 261120   ;;  %s684_s1 = inlined_call_operand.vmem [shape: f32[160,512], index: 1, kind: input, shape index: {}]   ;;  %s685_s0 = inlined_call_operand.vmem [shape: f32[16,160], index: 0, kind: input, shape index: {}]   ;;  %s686_s2 = inlined_call_operand.vmem [shape: f32[16,1], index: 2, kind: input, shape index: {}]   ;;  %s687_s3 = inlined_call_operand.vmem [shape: f32[16,512], index: 3, kind: output, shape index: {}]  }
   0x1   :  { %v19_v0 = vld [vmem:[%s684_s1 + $0x8] sm:$0xff]  ;;  %v21_v2 = vld [vmem:[%s684_s1 + $0x18] sm:$0xff]  ;;  %376 = vset.pattern.permute.xlu0 %v377_v3  ;;  %v18_v6 = vld [vmem:[%s684_s1] sm:$0xff] }
   0x2   :  { %v23_v1 = vld [vmem:[%s684_s1 + $0x28] sm:$0xff]  ;;  %v25_v5 = vld [vmem:[%s684_s1 + $0x38] sm:$0xff]  ;;  %v22_v7 = vld [vmem:[%s684_s1 + $0x20] sm:$0xff] }
   0x3   :  { %v295_v4 = vpack.c.bf16 %v23_v1, %v19_v0  ;;  %v335_v8 = vpack.c.bf16 %v25_v5, %v21_v2  ;;  %v297_v9 = vpack.c.bf16 %v22_v7, %v18_v6  ;;  %v20_v10 = vld [vmem:[%s684_s1 + $0x10] sm:$0xff]  ;;  %v27_v12 = vld [vmem:[%s684_s1 + $0x48] sm:$0xff]  ;;  %v29_v15 = vld [vmem:[%s684_s1 + $0x58] sm:$0xff] }
   0x4   :  { %v24_v11 = vld [vmem:[%s684_s1 + $0x30] sm:$0xff]  ;;  %v31_v14 = vld [vmem:[%s684_s1 + $0x68] sm:$0xff]  ;;  %v33_v16 = vld [vmem:[%s684_s1 + $0x78] sm:$0xff] }
   0x5   :  { %296 = vmatprep.subr.bf16.mxu0 %v295_v4  ;;  %v337_v13 = vpack.c.bf16 %v24_v11, %v20_v10  ;;  %336 = vmatprep.subr.bf16.mxu1 %v335_v8  ;;  %v299_v17 = vpack.c.bf16 %v31_v14, %v27_v12  ;;  %v339_v18 = vpack.c.bf16 %v33_v16, %v29_v15  ;;  %v26_v19 = vld [vmem:[%s684_s1 + $0x40] sm:$0xff]  ;;  %v28_v21 = vld [vmem:[%s684_s1 + $0x50] sm:$0xff]  ;;  %v35_v24 = vld [vmem:[%s684_s1 + $0x88] sm:$0xff] }
   0x6   :  { %298 = vmatpush1.bf16.msra.mxu0 %v297_v9  ;;  %v30_v20 = vld [vmem:[%s684_s1 + $0x60] sm:$0xff]  ;;  %v32_v23 = vld [vmem:[%s684_s1 + $0x70] sm:$0xff]  ;;  %v39_v25 = vld [vmem:[%s684_s1 + $0xa8] sm:$0xff] }
   0x7   :  { %338 = vmatpush1.bf16.msra.mxu1 %v337_v13  ;;  %v301_v22 = vpack.c.bf16 %v30_v20, %v26_v19  ;;  %300 = vmatprep.subr.bf16.mxu0 %v299_v17  ;;  %v341_v26 = vpack.c.bf16 %v32_v23, %v28_v21  ;;  %v303_v27 = vpack.c.bf16 %v39_v25, %v35_v24  ;;  %v37_v28 = vld [vmem:[%s684_s1 + $0x98] sm:$0xff]  ;;  %v34_v30 = vld [vmem:[%s684_s1 + $0x80] sm:$0xff]  ;;  %v36_v33 = vld [vmem:[%s684_s1 + $0x90] sm:$0xff] }
   0x8   :  { %340 = vmatprep.subr.bf16.mxu1 %v339_v18  ;;  %v41_v29 = vld [vmem:[%s684_s1 + $0xb8] sm:$0xff]  ;;  %v38_v32 = vld [vmem:[%s684_s1 + $0xa0] sm:$0xff]  ;;  %v40_v34 = vld [vmem:[%s684_s1 + $0xb0] sm:$0xff] }
   0x9   :  { %v343_v31 = vpack.c.bf16 %v41_v29, %v37_v28  ;;  %v305_v35 = vpack.c.bf16 %v38_v32, %v34_v30  ;;  %v43_v36 = vld [vmem:[%s684_s1 + $0xc8] sm:$0xff]  ;;  %v45_v38 = vld [vmem:[%s684_s1 + $0xd8] sm:$0xff]  ;;  %v345_v39 = vpack.c.bf16 %v40_v34, %v36_v33  ;;  %v42_v42 = vld [vmem:[%s684_s1 + $0xc0] sm:$0xff] }
   0xa   :  { %302 = vmatpush1.bf16.msra.mxu0 %v301_v22  ;;  %v47_v37 = vld [vmem:[%s684_s1 + $0xe8] sm:$0xff]  ;;  %v49_v41 = vld [vmem:[%s684_s1 + $0xf8] sm:$0xff]  ;;  %v46_v43 = vld [vmem:[%s684_s1 + $0xe0] sm:$0xff] }
   0xb   :  { %342 = vmatpush1.bf16.msra.mxu1 %v341_v26  ;;  %304 = vmatprep.subr.bf16.mxu0 %v303_v27  ;;  %v307_v40 = vpack.c.bf16 %v47_v37, %v43_v36  ;;  %v347_v44 = vpack.c.bf16 %v49_v41, %v45_v38  ;;  %v44_v45 = vld [vmem:[%s684_s1 + $0xd0] sm:$0xff]  ;;  %v51_v47 = vld [vmem:[%s684_s1 + $0x108] sm:$0xff]  ;;  %v53_v49 = vld [vmem:[%s684_s1 + $0x118] sm:$0xff]  ;;  %v309_v51 = vpack.c.bf16 %v46_v43, %v42_v42 }
   0xc   :  { %344 = vmatprep.subr.bf16.mxu1 %v343_v31  ;;  %v48_v46 = vld [vmem:[%s684_s1 + $0xf0] sm:$0xff]  ;;  %v55_v48 = vld [vmem:[%s684_s1 + $0x128] sm:$0xff]  ;;  %v57_v50 = vld [vmem:[%s684_s1 + $0x138] sm:$0xff] }
   0xd   :  { %v349_v52 = vpack.c.bf16 %v48_v46, %v44_v45  ;;  %v311_v53 = vpack.c.bf16 %v55_v48, %v51_v47  ;;  %v50_v54 = vld [vmem:[%s684_s1 + $0x100] sm:$0xff]  ;;  %v52_v56 = vld [vmem:[%s684_s1 + $0x110] sm:$0xff]  ;;  %v351_v57 = vpack.c.bf16 %v57_v50, %v53_v49  ;;  %v59_v59 = vld [vmem:[%s684_s1 + $0x148] sm:$0xff] }
   0xe   :  { %306 = vmatpush1.bf16.msra.mxu0 %v305_v35  ;;  %v54_v55 = vld [vmem:[%s684_s1 + $0x120] sm:$0xff]  ;;  %v56_v58 = vld [vmem:[%s684_s1 + $0x130] sm:$0xff]  ;;  %v63_v60 = vld [vmem:[%s684_s1 + $0x168] sm:$0xff] }
   0xf   :  { %346 = vmatpush1.bf16.msra.mxu1 %v345_v39  ;;  %308 = vmatprep.subr.bf16.mxu0 %v307_v40  ;;  %v61_v61 = vld [vmem:[%s684_s1 + $0x158] sm:$0xff]  ;;  %v313_v63 = vpack.c.bf16 %v54_v55, %v50_v54  ;;  %v353_v0 = vpack.c.bf16 %v56_v58, %v52_v56  ;;  %v315_v1 = vpack.c.bf16 %v63_v60, %v59_v59  ;;  %v58_v2 = vld [vmem:[%s684_s1 + $0x140] sm:$0xff]  ;;  %v60_v4 = vld [vmem:[%s684_s1 + $0x150] sm:$0xff] }
  0x10   :  { %348 = vmatprep.subr.bf16.mxu1 %v347_v44  ;;  %v65_v62 = vld [vmem:[%s684_s1 + $0x178] sm:$0xff]  ;;  %v62_v3 = vld [vmem:[%s684_s1 + $0x160] sm:$0xff]  ;;  %v64_v6 = vld [vmem:[%s684_s1 + $0x170] sm:$0xff] }
  0x11   :  { %v355_v5 = vpack.c.bf16 %v65_v62, %v61_v61  ;;  %v67_v7 = vld [vmem:[%s684_s1 + $0x188] sm:$0xff]  ;;  %v69_v9 = vld [vmem:[%s684_s1 + $0x198] sm:$0xff]  ;;  %v317_v11 = vpack.c.bf16 %v62_v3, %v58_v2  ;;  %v357_v12 = vpack.c.bf16 %v64_v6, %v60_v4  ;;  %v66_v14 = vld [vmem:[%s684_s1 + $0x180] sm:$0xff] }
  0x12   :  { %310 = vmatpush1.bf16.msra.mxu0 %v309_v51  ;;  %v71_v8 = vld [vmem:[%s684_s1 + $0x1a8] sm:$0xff]  ;;  %v73_v10 = vld [vmem:[%s684_s1 + $0x1b8] sm:$0xff]  ;;  %v70_v15 = vld [vmem:[%s684_s1 + $0x1a0] sm:$0xff] }
  0x13   :  { %350 = vmatpush1.bf16.msra.mxu1 %v349_v52  ;;  %312 = vmatprep.subr.bf16.mxu0 %v311_v53  ;;  %v319_v13 = vpack.c.bf16 %v71_v8, %v67_v7  ;;  %v68_v16 = vld [vmem:[%s684_s1 + $0x190] sm:$0xff]  ;;  %v359_v17 = vpack.c.bf16 %v73_v10, %v69_v9  ;;  %v75_v19 = vld [vmem:[%s684_s1 + $0x1c8] sm:$0xff]  ;;  %v77_v21 = vld [vmem:[%s684_s1 + $0x1d8] sm:$0xff]  ;;  %v321_v23 = vpack.c.bf16 %v70_v15, %v66_v14 }
  0x14   :  { %352 = vmatprep.subr.bf16.mxu1 %v351_v57  ;;  %v72_v18 = vld [vmem:[%s684_s1 + $0x1b0] sm:$0xff]  ;;  %v79_v20 = vld [vmem:[%s684_s1 + $0x1e8] sm:$0xff]  ;;  %v81_v22 = vld [vmem:[%s684_s1 + $0x1f8] sm:$0xff] }
  0x15   :  { %v74_v24 = vld [vmem:[%s684_s1 + $0x1c0] sm:$0xff]  ;;  %v361_v25 = vpack.c.bf16 %v72_v18, %v68_v16  ;;  %v323_v26 = vpack.c.bf16 %v79_v20, %v75_v19  ;;  %v76_v28 = vld [vmem:[%s684_s1 + $0x1d0] sm:$0xff]  ;;  %v363_v30 = vpack.c.bf16 %v81_v22, %v77_v21  ;;  %v83_v31 = vld [vmem:[%s684_s1 + $0x208] sm:$0xff] }
  0x16   :  { %314 = vmatpush1.bf16.msra.mxu0 %v313_v63  ;;  %v78_v27 = vld [vmem:[%s684_s1 + $0x1e0] sm:$0xff]  ;;  %v80_v29 = vld [vmem:[%s684_s1 + $0x1f0] sm:$0xff]  ;;  %v87_v32 = vld [vmem:[%s684_s1 + $0x228] sm:$0xff] }
  0x17   :  { %354 = vmatpush1.bf16.msra.mxu1 %v353_v0  ;;  %316 = vmatprep.subr.bf16.mxu0 %v315_v1  ;;  %v15_v33 = vld [vmem:[%s685_s0 + $0x8] sm:$0xff]  ;;  %v85_v34 = vld [vmem:[%s684_s1 + $0x218] sm:$0xff]  ;;  %v325_v36 = vpack.c.bf16 %v78_v27, %v74_v24  ;;  %v98_v37 = vld [vmem:[%s686_s2] sm:$0xff]  ;;  %v365_v38 = vpack.c.bf16 %v80_v29, %v76_v28  ;;  %v327_v39 = vpack.c.bf16 %v87_v32, %v83_v31 }
  0x18   :  { %356 = vmatprep.subr.bf16.mxu1 %v355_v5  ;;  %v89_v35 = vld [vmem:[%s684_s1 + $0x238] sm:$0xff]  ;;  %291 = vmatprep.mubr.msk.f32.mxu0 %vm110_vm0, %v15_v33  ;;  %v82_v40 = vld [vmem:[%s684_s1 + $0x200] sm:$0xff]  ;;  %v84_v42 = vld [vmem:[%s684_s1 + $0x210] sm:$0xff] }
  0x19   :  { %293 = vmatprep.mubr.msk.f32.mxu1 %vm110_vm0, %v15_v33  ;;  %v86_v41 = vld [vmem:[%s684_s1 + $0x220] sm:$0xff]  ;;  %v367_v43 = vpack.c.bf16 %v89_v35, %v85_v34  ;;  %v88_v44 = vld [vmem:[%s684_s1 + $0x230] sm:$0xff]  ;;  %v91_v45 = vld [vmem:[%s684_s1 + $0x248] sm:$0xff]  ;;  %102 = vperm.xlu0 %376, %v98_v37  }
  0x1a   :  { %318 = vmatpush1.bf16.msra.mxu0 %v317_v11  ;;  %v95_v46 = vld [vmem:[%s684_s1 + $0x268] sm:$0xff]  ;;  %v93_v47 = vld [vmem:[%s684_s1 + $0x258] sm:$0xff]  ;;  %v329_v50 = vpack.c.bf16 %v86_v41, %v82_v40  ;;  %v369_v51 = vpack.c.bf16 %v88_v44, %v84_v42  ;;  %v90_v53 = vld [vmem:[%s684_s1 + $0x240] sm:$0xff] }
  0x1b   :  { %358 = vmatpush1.bf16.msra.mxu1 %v357_v12  ;;  %320 = vmatprep.subr.bf16.mxu0 %v319_v13  ;;  %v97_v48 = vld [vmem:[%s684_s1 + $0x278] sm:$0xff]  ;;  %v99_v49 = vld [vmem:[%s686_s2 + $0x8] sm:$0xff]  ;;  %v331_v52 = vpack.c.bf16 %v95_v46, %v91_v45  ;;  %v94_v54 = vld [vmem:[%s684_s1 + $0x260] sm:$0xff] }
  0x1c   :  { %360 = vmatprep.subr.bf16.mxu1 %v359_v17  ;;  %v371_v55 = vpack.c.bf16 %v97_v48, %v93_v47  ;;  %v92_v56 = vld [vmem:[%s684_s1 + $0x250] sm:$0xff]  ;;  %v333_v58 = vpack.c.bf16 %v94_v54, %v90_v53  ;;  %v14_v60 = vld [vmem:[%s685_s0] sm:$0xff]  ;;  %v17_v61 = vld [vmem:[%s685_s0 + $0x18] sm:$0xff] }
  0x1d   :  { %v96_v57 = vld [vmem:[%s684_s1 + $0x270] sm:$0xff]  ;;  %107 = vperm.xlu0 %376, %v99_v49  }
  0x1e   :  { %322 = vmatpush1.bf16.msra.mxu0 %v321_v23  ;;  %v373_v59 = vpack.c.bf16 %v96_v57, %v92_v56  ;;  %v16_v62 = vld [vmem:[%s685_s0 + $0x10] sm:$0xff] }
  0x1f   :  { %362 = vmatpush1.bf16.msra.mxu1 %v361_v25  ;;  %324 = vmatprep.subr.bf16.mxu0 %v323_v26 }
  0x20   :  { %364 = vmatprep.subr.bf16.mxu1 %v363_v30 }
  0x22   :  { %326 = vmatpush1.bf16.msra.mxu0 %v325_v36 }
  0x23   :  { %366 = vmatpush1.bf16.msra.mxu1 %v365_v38  ;;  %328 = vmatprep.subr.bf16.mxu0 %v327_v39 }
  0x24   :  { %368 = vmatprep.subr.bf16.mxu1 %v367_v43 }
  0x26   :  { %330 = vmatpush1.bf16.msra.mxu0 %v329_v50 }
  0x27   :  { %370 = vmatpush1.bf16.msra.mxu1 %v369_v51  ;;  %332 = vmatprep.subr.bf16.mxu0 %v331_v52 }
  0x28   :  { %372 = vmatprep.subr.bf16.mxu1 %v371_v55 }
  0x2a   :  { %334 = vmatpush1.bf16.msra.mxu0 %v333_v58 }
  0x2b   :  { %374 = vmatpush1.bf16.msra.mxu1 %v373_v59 }
  0x2d   :  { %182 = vmatmul.mubr.f32.vlgmr.msra.gmra.mrb[0].mxu0 %v14_v60 }
  0x2e   :  { %259 = vmatmul.mubr.f32.vlgmr.msra.gmra.mrb[0].mxu1 %v14_v60  ;;  %292 = vmatprep.mubr.msk.f32.mxu0 %vm110_vm0, %v17_v61 }
  0x2f   :  { %294 = vmatprep.mubr.msk.f32.mxu1 %vm110_vm0, %v17_v61 }
  0x31   :  { %188 = vmatmul.mubr.f32.gmra.mrb[2].mxu0 %v16_v62 }
  0x32   :  { %265 = vmatmul.mubr.f32.gmra.mrb[2].mxu1 %v16_v62 }
  0x98   :  { %v103_v63 = vpop.permute.xlu0 %102 }
  0x9c   :  { %v108_v10 = vpop.permute.xlu0 %107 }
 0x100   :  { %v183_v0 = vpop.f32.mrb[0].mxu0 }
 0x101   :  { %v184_v1 = vadd.f32 %v183_v0, %v103_v63  ;;  %v260_v2 = vpop.f32.mrb[0].mxu1  ;;  %v185_v3 = vpop.f32.mrb[1].mxu0 }
 0x102   :  { %v261_v4 = vadd.f32 %v260_v2, %v103_v63  ;;  %v186_v5 = vadd.f32 %v185_v3, %v103_v63  ;;  %v262_v6 = vpop.f32.mrb[1].mxu1 }
 0x103   :  { %v271_v7 = vmax.f32 %v184_v1, 0.0  ;;  %v263_v8 = vadd.f32 %v262_v6, %v103_v63 }
 0x104   :  { %v273_v9 = vmax.f32 %v261_v4, 0.0  ;;  %v272_v11 = vmax.f32 %v186_v5, 0.0  ;;  %v189_v12 = vpop.f32.mrb[2].mxu0 }
 0x105   :  { %279 = vst [vmem:[%s687_s3] sm:$0xff] %v271_v7  ;;  %v274_v13 = vmax.f32 %v263_v8, 0.0  ;;  %v190_v14 = vadd.f32 %v189_v12, %v108_v10  ;;  %v266_v15 = vpop.f32.mrb[2].mxu1  ;;  %v191_v16 = vpop.f32.mrb[3].mxu0 }
 0x106   :  { %281 = vst [vmem:[%s687_s3 + $0x10] sm:$0xff] %v273_v9  ;;  %280 = vst [vmem:[%s687_s3 + $0x8] sm:$0xff] %v272_v11  ;;  %v267_v17 = vadd.f32 %v266_v15, %v108_v10  ;;  %v192_v18 = vadd.f32 %v191_v16, %v108_v10  ;;  %v268_v19 = vpop.f32.mrb[3].mxu1 }
 0x107   :  { %282 = vst [vmem:[%s687_s3 + $0x18] sm:$0xff] %v274_v13  ;;  %v275_v20 = vmax.f32 %v190_v14, 0.0  ;;  %v269_v21 = vadd.f32 %v268_v19, %v108_v10 }
 0x108   :  { %v277_v22 = vmax.f32 %v267_v17, 0.0  ;;  %v276_v23 = vmax.f32 %v192_v18, 0.0 }
 0x109   :  { %283 = vst [vmem:[%s687_s3 + $0x20] sm:$0xff] %v275_v20  ;;  %v278_v24 = vmax.f32 %v269_v21, 0.0 }
 0x10a   :  { %285 = vst [vmem:[%s687_s3 + $0x30] sm:$0xff] %v277_v22  ;;  %284 = vst [vmem:[%s687_s3 + $0x28] sm:$0xff] %v276_v23 }
 0x10b   :  { %286 = vst [vmem:[%s687_s3 + $0x38] sm:$0xff] %v278_v24 }

</bundles_post_ra>
